<compile_context>
chip_gen: v6e
topology: v6e:2x2x1
jax: 0.10.0
libtpu: 0.0.40
codegen_flags: <defaults>
</compile_context>

<pallas_src>
import jax
import jax.numpy as jnp
from jax.experimental import pallas as pl
from jax.experimental.pallas import tpu as pltpu

EPS = 1e-6


# ---------------------------------------------------------------------------
# Kernels
# ---------------------------------------------------------------------------
def _qknorm_kernel_mean(q_ref, k_ref, qs_ref, ks_ref, qo_ref, ko_ref):
    """G == 1 path (lane-dense last dim, e.g. flux head_dim=128).

    mean(x^2) is a lane (XLU) reduce -> separate issue slot from the VPU work,
    and avoids multi-pass f32 MXU emulation on v5e/v7x entirely."""

    def rms(x_ref, s_ref, o_ref):
        x32 = x_ref[...].astype(jnp.float32)
        mean_sq = jnp.mean(x32 * x32, axis=-1, keepdims=True)
        inv = jax.lax.rsqrt(mean_sq + EPS)
        o_ref[...] = (x32 * inv * s_ref[...]).astype(o_ref.dtype)

    rms(q_ref, qs_ref, qo_ref)
    rms(k_ref, ks_ref, ko_ref)


def _qknorm_kernel_seg(q_ref, k_ref, qs_ref, ks_ref, seg_ref, qo_ref, ko_ref):
    """G > 1 path: G consecutive rows folded into the 128-lane axis.

    seg is a (GD, GD) block-diagonal bf16 matrix with 1/D in each DxD segment,
    so (x^2) @ seg is the per-segment mean of x^2 already broadcast across the
    segment's lanes. bf16 inputs + f32 accumulation = one MXU pass."""
    seg = seg_ref[...]

    def rms(x_ref, s_ref, o_ref):
        x32 = x_ref[...].astype(jnp.float32)
        x2 = (x32 * x32).astype(jnp.bfloat16)
        mean_sq = jnp.dot(x2, seg, preferred_element_type=jnp.float32)
        inv = jax.lax.rsqrt(mean_sq + EPS)
        o_ref[...] = (x32 * inv * s_ref[...]).astype(o_ref.dtype)

    rms(q_ref, qs_ref, qo_ref)
    rms(k_ref, ks_ref, ko_ref)


# ---------------------------------------------------------------------------
# Wrapper helpers
# ---------------------------------------------------------------------------
def _tpu_vmem_and_cores():
    """Best-effort trace-time HW probe; conservative fallbacks if unavailable."""
    vmem_cap = 64 * 1024 * 1024          # conservative default (= v7x per-TC VMEM)
    num_cores = 1
    try:
        info = pltpu.get_tpu_info()
    except Exception:
        info = None
    if info is not None:
        cap = getattr(info, "vmem_capacity_bytes", None)
        if isinstance(cap, int) and cap > 0:
            vmem_cap = cap
        for name in ("num_cores", "num_tensorcores", "tensorcore_count", "core_count"):
            val = getattr(info, name, None)
            if isinstance(val, int) and val > 1:
                num_cores = val
                break
    return vmem_cap, num_cores


def _rms_jnp(x, scale, out_dtype):
    x32 = x.astype(jnp.float32)
    inv = jax.lax.rsqrt(jnp.mean(x32 * x32, axis=-1, keepdims=True) + EPS)
    return (x32 * inv * scale.astype(jnp.float32)).astype(out_dtype)


def _qknorm_2d(q2d, k2d, query_scale, key_scale, out_dtype, G, row_tile):
    """Run the Pallas kernel on (n_rows, D) slabs; caller ensures n_rows % G == 0."""
    n_rows, D = q2d.shape
    GD = G * D
    n_fold = n_rows // G
    use_seg = G > 1

    qf = q2d.reshape(n_fold, GD)
    kf = k2d.reshape(n_fold, GD)
    qs = jnp.tile(query_scale.astype(jnp.float32).reshape(1, D), (1, G))
    ks = jnp.tile(key_scale.astype(jnp.float32).reshape(1, D), (1, G))

    in_bytes = jnp.dtype(q2d.dtype).itemsize
    out_bytes = jnp.dtype(out_dtype).itemsize

    vmem_cap, num_cores = _tpu_vmem_and_cores()

    # Per-row VMEM: 4 streams (q, k, qo, ko) double-buffered + allowance for
    # in-kernel f32 temporaries (x32, x^2 / broadcast inv).
    per_row_io = 2 * GD * 2 * (in_bytes + out_bytes)
    per_row = per_row_io + 3 * GD * 4

    if row_tile is None:
        budget = min(int(vmem_cap * 0.45), 48 * 1024 * 1024)
        row_tile = budget // max(per_row, 1)
    row_tile = int(row_tile)
    row_tile = max(8, min(row_tile, 8192))
    if row_tile >= n_fold:
        row_tile = n_fold                    # single block == full array dim (always legal)
    elif row_tile >= 16:
        row_tile = (row_tile // 16) * 16     # multiple of 16 covers bf16 sublane packing

    # Ragged trailing block is fine: every row is independent, OOB garbage reads
    # only affect rows whose stores are masked.
    grid = (pl.cdiv(n_fold, row_tile),)

    row_spec = pl.BlockSpec((row_tile, GD), lambda i: (i, 0))
    scale_spec = pl.BlockSpec((1, GD), lambda i: (0, 0))

    in_specs = [row_spec, row_spec, scale_spec, scale_spec]
    operands = [qf, kf, qs, ks]
    if use_seg:
        lane = jnp.arange(GD, dtype=jnp.int32)
        seg = jnp.where(lane[:, None] // D == lane[None, :] // D,
                        jnp.float32(1.0 / D),
                        jnp.float32(0.0)).astype(jnp.bfloat16)
        in_specs.append(pl.BlockSpec((GD, GD), lambda i: (0, 0)))
        operands.append(seg)
        kernel = _qknorm_kernel_seg
    else:
        kernel = _qknorm_kernel_mean

    out_shape = (jax.ShapeDtypeStruct((n_fold, GD), out_dtype),
                 jax.ShapeDtypeStruct((n_fold, GD), out_dtype))

    # VMEM limit: actual footprint + headroom, never above ~85% of physical.
    footprint = row_tile * per_row + (2 * GD * GD * 2 if use_seg else 0) + 4 * GD * 4
    vmem_limit = max(16 * 1024 * 1024,
                     min(int(vmem_cap * 0.85), footprint + (4 << 20)))

    # Split the row axis across TensorCores when the chip has more than one
    # (v7x); plain "parallel" otherwise.
    if num_cores > 1 and grid[0] >= num_cores:
        dim_sem = (pltpu.CORE_PARALLEL,)
    else:
        dim_sem = (pltpu.PARALLEL,)

    n_proc = grid[0] * row_tile              # rows actually lowered (incl. ragged pad)
    cost = pl.CostEstimate(
        flops=int(2 * 5 * n_proc * GD
                  + (2 * 2 * n_proc * GD * GD if use_seg else 0)),
        transcendentals=int(2 * n_proc * (GD if use_seg else 1)),
        bytes_accessed=int(2 * n_fold * GD * (in_bytes + out_bytes)
                           + (GD * GD * 2 if use_seg else 0) + 2 * GD * 4),
    )

    qo, ko = pl.pallas_call(
        kernel,
        out_shape=out_shape,
        grid_spec=pltpu.PrefetchScalarGridSpec(
            num_scalar_prefetch=0,
            grid=grid,
            in_specs=in_specs,
            out_specs=[row_spec, row_spec],
        ),
        compiler_params=pltpu.CompilerParams(
            dimension_semantics=dim_sem,
            vmem_limit_bytes=vmem_limit,
        ),
        cost_estimate=cost,
    )(*operands)

    return qo.reshape(n_rows, D), ko.reshape(n_rows, D)


def qknorm(q, k, v, query_scale, key_scale, *, row_tile=None):
    """Pallas QKNorm: (rms_norm(q)*query_scale, rms_norm(k)*key_scale), both cast
    to v.dtype. q/k: (..., D); scales: (D,)."""
    assert q.shape == k.shape
    *lead, D = q.shape
    n_rows = 1
    for s in lead:
        n_rows *= s
    out_dtype = v.dtype

    # Lane folding: pack G consecutive rows into the 128-lane axis when D < 128
    # so every load/store is a full 128-lane slab (no masked vst.msk).
    if D < 128 and 128 % D == 0:
        G = 128 // D
    else:
        # flux head_dim = 128 lands here and is already lane-dense.
        # NOTE: D > 128 with D % 128 != 0 still works, but stores are
        # lane-padded (masked partial stores) -- not the flux case.
        G = 1
    main = (n_rows // G) * G
    rem = n_rows - main

    q_flat = q.reshape(n_rows, D)
    k_flat = k.reshape(n_rows, D)

    qo_m = ko_m = None
    if main > 0:
        q_main = q_flat if rem == 0 else q_flat[:main]
        k_main = k_flat if rem == 0 else k_flat[:main]
        qo_m, ko_m = _qknorm_2d(q_main, k_main, query_scale, key_scale,
                                out_dtype, G, row_tile)

    if rem:
        # < G leftover rows: tiny pure-JAX epilogue keeps the bulk lane-dense.
        qo_t = _rms_jnp(q_flat[main:], query_scale, out_dtype)
        ko_t = _rms_jnp(k_flat[main:], key_scale, out_dtype)
        if main > 0:
            qo = jnp.concatenate([qo_m, qo_t], axis=0)
            ko = jnp.concatenate([ko_m, ko_t], axis=0)
        else:
            qo, ko = qo_t, ko_t
    else:
        qo, ko = qo_m, ko_m

    return qo.reshape(q.shape), ko.reshape(k.shape)


# ---------------------------------------------------------------------------
# Reference + tests
# ---------------------------------------------------------------------------
def _qknorm_ref(q, k, v, query_scale, key_scale):
    return (_rms_jnp(q, query_scale, v.dtype), _rms_jnp(k, key_scale, v.dtype))


def _check(q, k, v, qscale, kscale, **kw):
    qo, ko = qknorm(q, k, v, qscale, kscale, **kw)
    jax.block_until_ready((qo, ko))
    qr, kr = _qknorm_ref(q, k, v, qscale, kscale)
    assert qo.dtype == v.dtype and ko.dtype == v.dtype
    assert qo.shape == q.shape and ko.shape == k.shape
    assert jnp.allclose(qo.astype(jnp.float32), qr.astype(jnp.float32),
                        atol=2e-2, rtol=2e-2)
    assert jnp.allclose(ko.astype(jnp.float32), kr.astype(jnp.float32),
                        atol=2e-2, rtol=2e-2)


if __name__ == "__main__":
    root = jax.random.PRNGKey(0)

    def make(case, shape, dq, dv):
        k1, k2, k3 = jax.random.split(jax.random.fold_in(root, case), 3)
        q = jax.random.normal(k1, shape, dtype=dq)
        k = jax.random.normal(k2, shape, dtype=dq)
        v = jax.random.normal(k3, shape, dtype=dv)
        D = shape[-1]
        qscale = 1.0 + 0.01 * jnp.arange(D, dtype=jnp.float32)
        kscale = 1.0 - 0.01 * jnp.arange(D, dtype=jnp.float32)
        return q, k, v, qscale, kscale

    # 1) D < 128 lane-folded path (G = 4), f32 inputs, bf16 output.
    _check(*make(1, (2, 2, 8, 32), jnp.float32, jnp.bfloat16))

    # 2) D == 128 (flux head_dim), lane-dense XLU-mean path, bf16 throughout.
    _check(*make(2, (1, 2, 16, 128), jnp.bfloat16, jnp.bfloat16))

    # 3) Ragged trailing block: 12 rows with row_tile=8 (last block masked).
    _check(*make(3, (1, 1, 12, 128), jnp.float32, jnp.float32), row_tile=8)

    # 4) n_rows % G != 0: lane-dense bulk + tiny pure-JAX epilogue.
    _check(*make(4, (1, 1, 10, 32), jnp.float32, jnp.float32))

    print("KERNEL_OK")
</pallas_src>

<mosaic_0001>
module attributes {stable_mosaic.version = 11 : i64} {
  func.func @_qknorm_kernel_seg(%arg0: i32, %arg1: memref<8x128xf32, #tpu.memory_space<vmem>>, %arg2: memref<8x128xf32, #tpu.memory_space<vmem>>, %arg3: memref<1x128xf32, #tpu.memory_space<vmem>>, %arg4: memref<1x128xf32, #tpu.memory_space<vmem>>, %arg5: memref<128x128xbf16, #tpu.memory_space<vmem>>, %arg6: memref<8x128xbf16, #tpu.memory_space<vmem>>, %arg7: memref<8x128xbf16, #tpu.memory_space<vmem>>) attributes {dimension_semantics = [#tpu.dimension_semantics<parallel>], iteration_bounds = array<i64: 1>, scalar_prefetch = 0 : i64, scratch_operands = 0 : i64, tpu.core_type = #tpu.core_type<tc>, window_params = [{transform_indices = @transform_0, window_bounds = array<i64: 8, 128>}, {transform_indices = @transform_1, window_bounds = array<i64: 8, 128>}, {pipeline_mode = #tpu.pipeline_mode<synchronous>, transform_indices = @transform_2, window_bounds = array<i64: 1, 128>}, {pipeline_mode = #tpu.pipeline_mode<synchronous>, transform_indices = @transform_3, window_bounds = array<i64: 1, 128>}, {pipeline_mode = #tpu.pipeline_mode<synchronous>, transform_indices = @transform_4, window_bounds = array<i64: 128, 128>}, {transform_indices = @transform_5, window_bounds = array<i64: 8, 128>}, {transform_indices = @transform_6, window_bounds = array<i64: 8, 128>}]} {
    %c0 = arith.constant 0 : index
    %c0_0 = arith.constant 0 : index
    %0 = vector.load %arg5[%c0, %c0_0] : memref<128x128xbf16, #tpu.memory_space<vmem>>, vector<128x128xbf16>
    %c0_1 = arith.constant 0 : index
    %c0_2 = arith.constant 0 : index
    %1 = vector.load %arg1[%c0_1, %c0_2] : memref<8x128xf32, #tpu.memory_space<vmem>>, vector<8x128xf32>
    %2 = arith.mulf %1, %1 : vector<8x128xf32>
    %3 = arith.truncf %2 : vector<8x128xf32> to vector<8x128xbf16>
    %cst = arith.constant dense<0.000000e+00> : vector<8x128xf32>
    %4 = tpu.matmul %3, %0, %cst {dimension_numbers = #tpu.dot_dimension_numbers<[1], [0], [0], [1], [0, 0, 1, 1], [], []>} : vector<8x128xbf16>, vector<128x128xbf16>, vector<8x128xf32> -> vector<8x128xf32>
    %cst_3 = arith.constant 9.99999997E-7 : f32
    %5 = vector.broadcast %cst_3 : f32 to vector<8x128xf32>
    %6 = arith.addf %4, %5 : vector<8x128xf32>
    %7 = math.rsqrt %6 : vector<8x128xf32>
    %8 = arith.mulf %1, %7 : vector<8x128xf32>
    %c0_4 = arith.constant 0 : index
    %c0_5 = arith.constant 0 : index
    %9 = vector.load %arg3[%c0_4, %c0_5] : memref<1x128xf32, #tpu.memory_space<vmem>>, vector<1x128xf32>
    %10 = vector.broadcast %9 : vector<1x128xf32> to vector<8x128xf32>
    %11 = arith.mulf %8, %10 : vector<8x128xf32>
    %12 = arith.truncf %11 : vector<8x128xf32> to vector<8x128xbf16>
    %c0_6 = arith.constant 0 : index
    %c0_7 = arith.constant 0 : index
    %13 = vector.load %arg6[%c0_6, %c0_7] : memref<8x128xbf16, #tpu.memory_space<vmem>>, vector<8x128xbf16>
    tpu.vector_store %arg6[%c0_6, %c0_7], %12 {strides = array<i32>} : memref<8x128xbf16, #tpu.memory_space<vmem>>, vector<8x128xbf16>,
    %c0_8 = arith.constant 0 : index
    %c0_9 = arith.constant 0 : index
    %14 = vector.load %arg2[%c0_8, %c0_9] : memref<8x128xf32, #tpu.memory_space<vmem>>, vector<8x128xf32>
    %15 = arith.mulf %14, %14 : vector<8x128xf32>
    %16 = arith.truncf %15 : vector<8x128xf32> to vector<8x128xbf16>
    %cst_10 = arith.constant dense<0.000000e+00> : vector<8x128xf32>
    %17 = tpu.matmul %16, %0, %cst_10 {dimension_numbers = #tpu.dot_dimension_numbers<[1], [0], [0], [1], [0, 0, 1, 1], [], []>} : vector<8x128xbf16>, vector<128x128xbf16>, vector<8x128xf32> -> vector<8x128xf32>
    %cst_11 = arith.constant 9.99999997E-7 : f32
    %18 = vector.broadcast %cst_11 : f32 to vector<8x128xf32>
    %19 = arith.addf %17, %18 : vector<8x128xf32>
    %20 = math.rsqrt %19 : vector<8x128xf32>
    %21 = arith.mulf %14, %20 : vector<8x128xf32>
    %c0_12 = arith.constant 0 : index
    %c0_13 = arith.constant 0 : index
    %22 = vector.load %arg4[%c0_12, %c0_13] : memref<1x128xf32, #tpu.memory_space<vmem>>, vector<1x128xf32>
    %23 = vector.broadcast %22 : vector<1x128xf32> to vector<8x128xf32>
    %24 = arith.mulf %21, %23 : vector<8x128xf32>
    %25 = arith.truncf %24 : vector<8x128xf32> to vector<8x128xbf16>
    %c0_14 = arith.constant 0 : index
    %c0_15 = arith.constant 0 : index
    %26 = vector.load %arg7[%c0_14, %c0_15] : memref<8x128xbf16, #tpu.memory_space<vmem>>, vector<8x128xbf16>
    tpu.vector_store %arg7[%c0_14, %c0_15], %25 {strides = array<i32>} : memref<8x128xbf16, #tpu.memory_space<vmem>>, vector<8x128xbf16>,
    return
  }
  func.func @transform_0(%arg0: i32) -> (i32, i32) {
    %c0_i32 = arith.constant 0 : i32
    %c0_i32_0 = arith.constant 0 : i32
    return %arg0, %c0_i32 : i32, i32
  }
  func.func @transform_1(%arg0: i32) -> (i32, i32) {
    %c0_i32 = arith.constant 0 : i32
    %c0_i32_0 = arith.constant 0 : i32
    return %arg0, %c0_i32 : i32, i32
  }
  func.func @transform_2(%arg0: i32) -> (i32, i32) {
    %c0_i32 = arith.constant 0 : i32
    %c0_i32_0 = arith.constant 0 : i32
    %c0_i32_1 = arith.constant 0 : i32
    return %c0_i32, %c0_i32_0 : i32, i32
  }
  func.func @transform_3(%arg0: i32) -> (i32, i32) {
    %c0_i32 = arith.constant 0 : i32
    %c0_i32_0 = arith.constant 0 : i32
    %c0_i32_1 = arith.constant 0 : i32
    return %c0_i32, %c0_i32_0 : i32, i32
  }
  func.func @transform_4(%arg0: i32) -> (i32, i32) {
    %c0_i32 = arith.constant 0 : i32
    %c0_i32_0 = arith.constant 0 : i32
    %c0_i32_1 = arith.constant 0 : i32
    return %c0_i32, %c0_i32_0 : i32, i32
  }
  func.func @transform_5(%arg0: i32) -> (i32, i32) {
    %c0_i32 = arith.constant 0 : i32
    %c0_i32_0 = arith.constant 0 : i32
    return %arg0, %c0_i32 : i32, i32
  }
  func.func @transform_6(%arg0: i32) -> (i32, i32) {
    %c0_i32 = arith.constant 0 : i32
    %c0_i32_0 = arith.constant 0 : i32
    return %arg0, %c0_i32 : i32, i32
  }
}

</mosaic_0001>

<bundles_post_ra>
// kernel: tpu_custom_call.1
= control target key start
LH: loop header
LB: loop body
LE: loop exit
PB: predicated region body
PF: predicated region fallthrough
CT: control target
= control target key end

     0   :  { %12 = vsyncpa [#allocation3], 0  ;;  %s528_s0 = inlined_call_operand.hbm [shape: f32[8,128], index: 0, kind: input, shape index: {}]   ;;  %s529_s1 = inlined_call_operand.hbm [shape: f32[8,128], index: 1, kind: input, shape index: {}]   ;;  %s530_s2 = inlined_call_operand.vmem [shape: f32[1,128], index: 2, kind: input, shape index: {}]   ;;  %s531_s3 = inlined_call_operand.vmem [shape: f32[1,128], index: 3, kind: input, shape index: {}]   ;;  %s532_s4 = inlined_call_operand.hbm [shape: bf16[128,128], index: 4, kind: input, shape index: {}]   ;;  %s533_s5 = inlined_call_operand.hbm [shape: bf16[8,128], index: 5, kind: output, shape index: {0}]   ;;  %s534_s6 = inlined_call_operand.hbm [shape: bf16[8,128], index: 6, kind: output, shape index: {1}]  }
   0x1   :  { %13 = vsyncpa [#allocation6], 0 }
   0x2   :  { %14 = vsyncpa [#allocation4], 0 }
   0x3   :  { %15 = vsyncpa [#allocation10], 0  ;;  %s463_s21 = smov [#allocation5]   ;;  %s464_s23 = smov [#allocation2]  }
   0x4   :  { %s32_s22 = sshll.u32 %s463_s21, 4  ;;  %s22_s24 = sshll.u32 %s464_s23, 4  ;;  %s33_s22 = int_to_ptr.vmem [resolvable:$true] %s32_s22  ;;  %s23_s24 = int_to_ptr.vmem [resolvable:$true] %s22_s24 }
   0x5   :  { %s363_s25 = scalar_lea.vmem %s33_s22, 128  ;;  %p368_p1 = scmp.lt.s32.totalorder %s33_s22, %s33_s22 }
   0x6   :  { %p364_p0 = scmp.ne.s32.totalorder %s33_s22, %s363_s25  ;;  %p369_p2 = scmp.lt.s32.totalorder %s363_s25, %s363_s25 }
   0x8   :  { %p370_p3 = por %p369_p2, %p368_p1 }
   0xa   :  { %p371_p4 = pnand %p370_p3, %p364_p0 }
   0xc   :  { %374 = shalt.err (!%p371_p4)
}
   0xd   :  { %35 = dma.hbm_to_vmem [thread:$0]  %s529_s1, 128, %s33_s22, [#allocation6]  }
   0xe   :  { %s383_s28 = scalar_lea.vmem %s23_s24, 128  ;;  %p388_p6 = scmp.lt.s32.totalorder %s23_s24, %s23_s24 }
   0xf   :  { %p384_p5 = scmp.ne.s32.totalorder %s23_s24, %s383_s28  ;;  %p389_p7 = scmp.lt.s32.totalorder %s383_s28, %s383_s28 }
  0x11   :  { %p390_p8 = por %p389_p7, %p388_p6 }
  0x13   :  { %p391_p9 = pnand %p390_p8, %p384_p5 }
  0x15   :  { %394 = shalt.err (!%p391_p9)
}
  0x16   :  { %25 = dma.hbm_to_vmem [thread:$0]  %s528_s0, 128, %s23_s24, [#allocation3]  }
  0x17   :  { %s465_s7 = smov [#allocation7]  }
  0x18   :  { %s45_s8 = sshll.u32 %s465_s7, 4  ;;  %s46_s8 = int_to_ptr.vmem [resolvable:$true] %s45_s8 }
  0x19   :  { %s403_s9 = scalar_lea.vmem %s46_s8, 1024  ;;  %p408_p11 = scmp.lt.s32.totalorder %s46_s8, %s46_s8 }
  0x1a   :  { %p404_p10 = scmp.ne.s32.totalorder %s46_s8, %s403_s9  ;;  %p409_p12 = scmp.lt.s32.totalorder %s403_s9, %s403_s9 }
  0x1c   :  { %p410_p13 = por %p409_p12, %p408_p11 }
  0x1e   :  { %p411_p0 = pnand %p410_p13, %p404_p10 }
  0x20   :  { %414 = shalt.err (!%p411_p0)
}
  0x21   :  { %s466_s1 = smov 64   ;;  %s467_s10 = smov 4  }
  0x22   :  { %51 = dma.hbm_to_vmem [thread:$0]  %s532_s4, 1024, %s46_s8, [#allocation6], %s466_s1, %s466_s1, %s467_s10  }
  0x23   :  { %455 = dma.done.wait [#allocation3], 128  }
  0x24   :  { %456 = vsyncadd [#allocation3], 4294967168 }
  0x25   :  { %457 = dma.done.wait [#allocation6], 1152  }
  0x26   :  { %458 = vsyncadd [#allocation6], 4294966144  ;;  %v468_v0 = vmov 0.0   ;;  %vm469_vm0 = vmmov 0   ;;  %v343_v1 = vld [vmem:[#allocation7 + $0x38] sm:$0xff]   ;;  %v344_v2 = vld [vmem:[#allocation7 + $0x30] sm:$0xff]  }
  0x27   :  { %294 = vmatprep.subr.bf16.mxu0 %v468_v0  ;;  %314 = vmatprep.subr.bf16.mxu1 %v468_v0  ;;  %v345_v3 = vld [vmem:[#allocation7 + $0x28] sm:$0xff]   ;;  %v346_v4 = vld [vmem:[#allocation7 + $0x20] sm:$0xff]   ;;  %v347_v5 = vld [vmem:[#allocation7 + $0x18] sm:$0xff]   ;;  %s470_s15 = smov [#allocation8]   ;;  %s471_s17 = smov [#allocation9]  }
  0x28   :  { %310 = vmatprep.mubr.msk.bf16.mxu0 %vm469_vm0, %v468_v0  ;;  %330 = vmatprep.mubr.msk.bf16.mxu1 %vm469_vm0, %v468_v0  ;;  %v348_v6 = vld [vmem:[#allocation7 + $0x10] sm:$0xff]   ;;  %v349_v7 = vld [vmem:[#allocation7 + $0x8] sm:$0xff]   ;;  %v181_v9 = vld [vmem:[#allocation5] sm:$0xff]  ;;  %s242_s16 = sshll.u32 %s470_s15, 4  ;;  %s252_s18 = sshll.u32 %s471_s17, 4  ;;  %s243_s16 = int_to_ptr.vmem [resolvable:$true] %s242_s16  ;;  %s253_s18 = int_to_ptr.vmem [resolvable:$true] %s252_s18 }
  0x29   :  { %295 = vmatpush3.bf16.msra.mxu0 %v343_v1  ;;  %315 = vmatpush3.bf16.msra.mxu1 %v343_v1  ;;  %v78_v8 = vld [vmem:[#allocation2] sm:$0xff]  ;;  %v182_v11 = vmul.f32 %v181_v9, %v181_v9  ;;  %v350_v12 = vld [vmem:[#allocation7] sm:$0xff]   ;;  %s415_s19 = scalar_lea.vmem %s243_s16, 64  ;;  %p420_p2 = scmp.lt.s32.totalorder %s243_s16, %s243_s16 }
  0x2a   :  { %296 = vmatprep.subr.bf16.mxu0 %v468_v0  ;;  %316 = vmatprep.subr.bf16.mxu1 %v468_v0  ;;  %v79_v10 = vmul.f32 %v78_v8, %v78_v8  ;;  %v274_v26 = vld [vmem:[%s530_s2] ss:$0 sm:$0xff]  ;;  %p416_p1 = scmp.ne.s32.totalorder %s243_s16, %s415_s19  ;;  %p421_p3 = scmp.lt.s32.totalorder %s415_s19, %s415_s19 }
  0x2b   :  { %v183_v14 = vpack.c.bf16 %v182_v11, %v182_v11  ;;  %v275_v29 = vld [vmem:[%s531_s3] ss:$0 sm:$0xff] }
  0x2c   :  { %v80_v13 = vpack.c.bf16 %v79_v10, %v79_v10  ;;  %p422_p4 = por %p421_p3, %p420_p2 }
  0x2d   :  { %297 = vmatpush3.bf16.msra.mxu0 %v344_v2  ;;  %317 = vmatpush3.bf16.msra.mxu1 %v344_v2 }
  0x2e   :  { %298 = vmatprep.subr.bf16.mxu0 %v468_v0  ;;  %318 = vmatprep.subr.bf16.mxu1 %v468_v0  ;;  %p423_p5 = pnand %p422_p4, %p416_p1 }
  0x31   :  { %299 = vmatpush3.bf16.msra.mxu0 %v345_v3  ;;  %319 = vmatpush3.bf16.msra.mxu1 %v345_v3 }
  0x32   :  { %300 = vmatprep.subr.bf16.mxu0 %v468_v0  ;;  %320 = vmatprep.subr.bf16.mxu1 %v468_v0 }
  0x35   :  { %301 = vmatpush3.bf16.msra.mxu0 %v346_v4  ;;  %321 = vmatpush3.bf16.msra.mxu1 %v346_v4 }
  0x36   :  { %302 = vmatprep.subr.bf16.mxu0 %v468_v0  ;;  %322 = vmatprep.subr.bf16.mxu1 %v468_v0 }
  0x39   :  { %303 = vmatpush3.bf16.msra.mxu0 %v347_v5  ;;  %323 = vmatpush3.bf16.msra.mxu1 %v347_v5 }
  0x3a   :  { %304 = vmatprep.subr.bf16.mxu0 %v468_v0  ;;  %324 = vmatprep.subr.bf16.mxu1 %v468_v0 }
  0x3d   :  { %305 = vmatpush3.bf16.msra.mxu0 %v348_v6  ;;  %325 = vmatpush3.bf16.msra.mxu1 %v348_v6 }
  0x3e   :  { %306 = vmatprep.subr.bf16.mxu0 %v468_v0  ;;  %326 = vmatprep.subr.bf16.mxu1 %v468_v0 }
  0x41   :  { %307 = vmatpush3.bf16.msra.mxu0 %v349_v7  ;;  %327 = vmatpush3.bf16.msra.mxu1 %v349_v7 }
  0x42   :  { %308 = vmatprep.subr.bf16.mxu0 %v468_v0  ;;  %328 = vmatprep.subr.bf16.mxu1 %v468_v0 }
  0x45   :  { %309 = vmatpush3.bf16.msra.mxu0 %v350_v12  ;;  %329 = vmatpush3.bf16.msra.mxu1 %v350_v12 }
  0x48   :  { %311 = vmatmul.mubr.bf16.vlgmr.msra.gmra.mxu0 %v80_v13  ;;  %331 = vmatmul.mubr.bf16.vlgmr.msra.gmra.mxu1 %v183_v14 }
 0x108   :  { %v163_v15 = vpop.f32.mrf.mxu0  ;;  %v218_v16 = vpop.f32.mrf.mxu1 }
 0x109   :  { %v164_v17 = vadd.f32 1e-06, %v163_v15  ;;  %v219_v18 = vadd.f32 1e-06, %v218_v16 }
 0x10a   :  { %v312_v19 = vpop.f32.mrf.mxu0  ;;  %v332_v20 = vpop.f32.mrf.mxu1 }
 0x10b   :  { %351 = vrsqrt.f32 %v164_v17 }
 0x10c   :  { %353 = vrsqrt.f32 %v219_v18  ;;  %v166_v21 = vpop.f32.mrf.mxu0  ;;  %v221_v22 = vpop.f32.mrf.mxu1 }
 0x10e   :  { %v313_v23 = vpop.f32.mrf.mxu0  ;;  %v333_v24 = vpop.f32.mrf.mxu1 }
 0x118   :  { %v352_v25 = vpop.eup %351 }
 0x119   :  { %v354_v27 = vpop.eup %353  ;;  %v170_v28 = vmul.f32 %v352_v25, %v78_v8 }
 0x11a   :  { %v225_v30 = vmul.f32 %v354_v27, %v181_v9 }
 0x11b   :  { %v178_v31 = vmul.f32 %v274_v26, %v170_v28 }
 0x11c   :  { %v233_v32 = vmul.f32 %v275_v29, %v225_v30 }
 0x11d   :  { %v179_v33 = vpack.c.bf16 %v178_v31, %v178_v31 }
 0x11e   :  { %v234_v34 = vpack.c.bf16 %v233_v32, %v233_v32 }
 0x11f   :  { %180 = vst [vmem:[#allocation8] sm:$0xf] %v179_v33 }
 0x120   :  { %426 = shalt.err (!%p423_p5)
}
 0x121   :  { %245 = dma.vmem_to_hbm [thread:$0]  %s243_s16, 64, %s533_s5, [#allocation4]   ;;  %235 = vst [vmem:[#allocation9] sm:$0xf] %v234_v34 }
 0x122   :  { %s435_s20 = scalar_lea.vmem %s253_s18, 64  ;;  %p440_p7 = scmp.lt.s32.totalorder %s253_s18, %s253_s18 }
 0x123   :  { %p436_p6 = scmp.ne.s32.totalorder %s253_s18, %s435_s20  ;;  %p441_p8 = scmp.lt.s32.totalorder %s435_s20, %s435_s20 }
 0x125   :  { %p442_p9 = por %p441_p8, %p440_p7 }
 0x127   :  { %p443_p10 = pnand %p442_p9, %p436_p6 }
 0x129   :  { %446 = shalt.err (!%p443_p10)
}
 0x12a   :  { %255 = dma.vmem_to_hbm [thread:$0]  %s253_s18, 64, %s534_s6, [#allocation10]  }
 0x12b   :  { %459 = dma.done.wait [#allocation4], 64  }
 0x12c   :  { %460 = vsyncadd [#allocation4], 4294967232 }
 0x12d   :  { %461 = dma.done.wait [#allocation10], 64  }
 0x12e   :  { %462 = vsyncadd [#allocation10], 4294967232 }
 0x12f   :  { %262 = vsyncpa [#allocation3], 1 }
 0x130   :  { %263 = vsyncpa [#allocation6], 1 }
 0x131   :  { %264 = vsyncpa [#allocation4], 1 }
 0x132   :  { %265 = vsyncpa [#allocation10], 1 }

</bundles_post_ra>
